<compile_context>
chip_gen: v7x
topology: tpu7x:2x2x1
jax: 0.10.0
libtpu: 0.0.40
codegen_flags: <defaults>
</compile_context>

<pallas_src>
import functools

import numpy as np
import jax
import jax.numpy as jnp
from jax.experimental import pallas as pl
from jax.experimental.pallas import tpu as pltpu


def make_shell_masks(shape, n_bins):
    """Replicates FourierShellCorrelationLoss.make_shells -> (n_bins, H, W) 0/1 float32."""
    frame = np.amax(shape)
    max_r = (1.0 + np.amin(shape) / np.amax(shape)) / 2.0
    afocal, bfocal = shape[0] / 2, shape[1] / 2
    xx, yy = np.mgrid[:shape[0], :shape[1]]
    ellipse = ((xx - afocal) * 2 / frame) ** 2 + ((yy - bfocal) * 2 / frame) ** 2
    radii2 = np.power(np.linspace(0, max_r, n_bins + 1)[1:], 2.0)
    ellipses = [(ellipse < r2) for r2 in radii2]
    shells = [ellipses[0]] + [e2 ^ e1 for e1, e2 in zip(ellipses[:-1], ellipses[1:])]
    return np.stack(shells).astype(np.float32)


def kron_dft_operator(H, W):
    """Real/imag parts of K = F_H (x) F_W so that vec_row(FFT2(X)) = vec_row(X) @ K."""
    kh = np.arange(H)
    kw = np.arange(W)
    fh = np.exp(-2j * np.pi * np.outer(kh, kh) / H)
    fw = np.exp(-2j * np.pi * np.outer(kw, kw) / W)
    kk = np.kron(fh, fw)                      # (H*W, H*W) complex
    return kk.real.astype(np.float32), kk.imag.astype(np.float32)


def _msefsc_kernel(s_ref, kr_ref, ki_ref, mask_ref, shells_ref, mse_ref, *, batch):
    B = batch

    # Stacked rows prepared by the wrapper: [diff_0..diff_{B-1}, tgt_0..tgt_{B-1}, 0-pad]
    sr = s_ref[0]                    # (M_pad, HW) f32, real plane
    si = s_ref[1]                    # (M_pad, HW) f32, imag plane

    # ---- MSE lane-partial: sum over the diff rows only, exact f32 ---------
    # (the 256-lane reduction is finished in the wrapper's scalar glue)
    dr = sr[:B, :]
    di = si[:B, :]
    mse_ref[...] = jnp.sum(dr * dr + di * di, axis=0, keepdims=True)

    # ---- 2-D FFT of all rows: batched complex matmul against the Kronecker
    #      DFT operator, standard 4-multiply form, bf16 operands + f32 MXU acc.
    ar = sr.astype(jnp.bfloat16)
    ai = si.astype(jnp.bfloat16)
    kr = kr_ref[...]
    ki = ki_ref[...]
    yr = (jnp.dot(ar, kr, preferred_element_type=jnp.float32)
          - jnp.dot(ai, ki, preferred_element_type=jnp.float32))
    yi = (jnp.dot(ar, ki, preferred_element_type=jnp.float32)
          + jnp.dot(ai, kr, preferred_element_type=jnp.float32))

    power = yr * yr + yi * yi        # |FFT2|^2 per pixel, (M_pad, HW) f32

    # ---- Per-shell sums: ONE MXU matmul against the exact 0/1 mask matrix,
    #      kept in f32 for shell-ratio accuracy (cheap at M = 8 rows).
    # rows 0..B-1 -> err shells, rows B..2B-1 -> norm_coeff shells, rest -> 0.
    shells_ref[...] = jnp.dot(power, mask_ref[...],
                              preferred_element_type=jnp.float32)


@functools.partial(jax.jit, static_argnames=("n_bins",))
def msefsc(e, t, w, n_bins, reg_param):
    B, H, W, two = e.shape
    assert two == 2
    HW = H * W
    n_rows = 2 * B
    m_pad = max(8, ((n_rows + 7) // 8) * 8)        # full sublane groups on the MXU LHS
    n_pad = ((n_bins + 127) // 128) * 128          # lane-dense shells output

    # Hoisted into XLA (fuses with the layout change): exact f32 diff, single
    # re/im-major repack, [diff ; target ; zero-pad] row stacking.
    d_flat = jnp.moveaxis(e - t, -1, 0).reshape(2, B, HW)
    t_flat = jnp.moveaxis(t, -1, 0).reshape(2, B, HW)
    s = jnp.concatenate([d_flat, t_flat], axis=1)              # (2, 2B, HW)
    if m_pad > n_rows:
        s = jnp.pad(s, ((0, 0), (0, m_pad - n_rows), (0, 0)))  # (2, M_pad, HW)

    # Trace-time constants: Kronecker DFT operator (bf16 MXU operands) and the
    # flattened 0/1 shell-mask matrix (f32, exact).
    k_r, k_i = kron_dft_operator(H, W)
    kr = jnp.asarray(k_r, dtype=jnp.bfloat16)
    ki = jnp.asarray(k_i, dtype=jnp.bfloat16)

    masks = make_shell_masks((H, W), n_bins)                   # (n_bins, H, W) 0/1
    mask_mat = np.zeros((HW, n_pad), dtype=np.float32)
    mask_mat[:, :n_bins] = masks.reshape(n_bins, HW).T
    mask_mat = jnp.asarray(mask_mat)

    shells, mse_p = pl.pallas_call(
        functools.partial(_msefsc_kernel, batch=B),
        out_shape=(
            jax.ShapeDtypeStruct((m_pad, n_pad), jnp.float32),  # [err; nc; 0] shells
            jax.ShapeDtypeStruct((1, HW), jnp.float32),         # lane-partial MSE
        ),
        grid=(1,),
        in_specs=[
            pl.BlockSpec((2, m_pad, HW), lambda i: (0, 0, 0)),  # stacked re/im planes
            pl.BlockSpec((HW, HW), lambda i: (0, 0)),           # K real (bf16)
            pl.BlockSpec((HW, HW), lambda i: (0, 0)),           # K imag (bf16)
            pl.BlockSpec((HW, n_pad), lambda i: (0, 0)),        # shell masks (f32)
        ],
        out_specs=(
            pl.BlockSpec((m_pad, n_pad), lambda i: (0, 0)),
            pl.BlockSpec((1, HW), lambda i: (0, 0)),
        ),
        compiler_params=pltpu.CompilerParams(
            dimension_semantics=("arbitrary",),
            vmem_limit_bytes=32 * 1024 * 1024,
        ),
    )(s, kr, ki, mask_mat)

    # Tiny scalar glue (matches the PyTorch module exactly).
    numel = B * H * W * 2
    mse_val = jnp.sum(mse_p) * (2.0 / numel)
    err_s = shells[:B, :n_bins]                        # |FFT(e-t)|^2 shell sums
    nc_s = shells[B:n_rows, :n_bins]                   # |FFT(t)|^2 shell sums
    ratios = err_s / jnp.maximum(nc_s, 1e-12)          # torch.clamp(..., min=1e-12)
    per_shell = jnp.sum(ratios, axis=0)                # sum over batch
    fsc = jnp.sum(per_shell * w) / (n_bins * B)
    return mse_val + reg_param * fsc


def reference_msefsc(e, t, w, n_bins, reg_param):
    """Pure numpy reference mirroring the PyTorch module."""
    B, H, W, _ = e.shape
    ec = e[..., 0] + 1j * e[..., 1]
    tc = t[..., 0] + 1j * t[..., 1]
    mse_val = np.sum((e - t) ** 2) * (2.0 / e.size)
    masks = make_shell_masks((H, W), n_bins) > 0.5
    errors = np.abs(np.fft.fft2(ec - tc)) ** 2
    norm_c = np.abs(np.fft.fft2(tc)) ** 2
    per_shell = []
    for s in range(n_bins):
        tot = 0.0
        for b in range(B):
            num = errors[b][masks[s]].sum()
            den = max(norm_c[b][masks[s]].sum(), 1e-12)
            tot += num / den
        per_shell.append(tot)
    loss = sum(l * wv for l, wv in zip(per_shell, np.asarray(w)))
    fsc = loss / (n_bins * B)
    return float(mse_val + reg_param * fsc)


if __name__ == "__main__":
    B, H, W, n_bins = 2, 16, 16, 4
    reg_param = 0.1
    key = jax.random.PRNGKey(0)
    k1, k2, k3 = jax.random.split(key, 3)
    e = jax.random.normal(k1, (B, H, W, 2), dtype=jnp.float32)
    t = jax.random.normal(k2, (B, H, W, 2), dtype=jnp.float32)
    w = jax.random.uniform(k3, (n_bins,), dtype=jnp.float32)

    out = msefsc(e, t, w, n_bins, reg_param)
    out = jax.block_until_ready(out)

    ref = reference_msefsc(np.asarray(e), np.asarray(t), np.asarray(w), n_bins, reg_param)
    assert np.allclose(float(out), ref, rtol=2e-3, atol=1e-4), (float(out), ref)
    print("KERNEL_OK")
</pallas_src>

<mosaic_0001>
module attributes {stable_mosaic.version = 11 : i64} {
  func.func @_msefsc_kernel(%arg0: i32, %arg1: memref<2x8x256xf32, #tpu.memory_space<vmem>>, %arg2: memref<256x256xbf16, #tpu.memory_space<vmem>>, %arg3: memref<256x256xbf16, #tpu.memory_space<vmem>>, %arg4: memref<256x128xf32, #tpu.memory_space<vmem>>, %arg5: memref<8x128xf32, #tpu.memory_space<vmem>>, %arg6: memref<1x256xf32, #tpu.memory_space<vmem>>) attributes {dimension_semantics = [#tpu.dimension_semantics<arbitrary>], iteration_bounds = array<i64: 1>, scalar_prefetch = 0 : i64, scratch_operands = 0 : i64, tpu.core_type = #tpu.core_type<tc>, window_params = [{pipeline_mode = #tpu.pipeline_mode<synchronous>, transform_indices = @transform_0, window_bounds = array<i64: 2, 8, 256>}, {pipeline_mode = #tpu.pipeline_mode<synchronous>, transform_indices = @transform_1, window_bounds = array<i64: 256, 256>}, {pipeline_mode = #tpu.pipeline_mode<synchronous>, transform_indices = @transform_2, window_bounds = array<i64: 256, 256>}, {pipeline_mode = #tpu.pipeline_mode<synchronous>, transform_indices = @transform_3, window_bounds = array<i64: 256, 128>}, {pipeline_mode = #tpu.pipeline_mode<synchronous>, transform_indices = @transform_4, window_bounds = array<i64: 8, 128>}, {pipeline_mode = #tpu.pipeline_mode<synchronous>, transform_indices = @transform_5, window_bounds = array<i64: 1, 256>}]} {
    %c0 = arith.constant 0 : index
    %c0_0 = arith.constant 0 : index
    %c0_1 = arith.constant 0 : index
    %0 = vector.load %arg1[%c0, %c0_0, %c0_1] : memref<2x8x256xf32, #tpu.memory_space<vmem>>, vector<1x8x256xf32>
    %1 = vector.shape_cast %0 : vector<1x8x256xf32> to vector<8x256xf32>
    %c1 = arith.constant 1 : index
    %c0_2 = arith.constant 0 : index
    %c0_3 = arith.constant 0 : index
    %2 = vector.load %arg1[%c1, %c0_2, %c0_3] : memref<2x8x256xf32, #tpu.memory_space<vmem>>, vector<1x8x256xf32>
    %3 = vector.shape_cast %2 : vector<1x8x256xf32> to vector<8x256xf32>
    %4 = vector.extract_strided_slice %1 {offsets = [0, 0], sizes = [2, 256], strides = [1, 1]} : vector<8x256xf32> to vector<2x256xf32>
    %5 = vector.extract_strided_slice %3 {offsets = [0, 0], sizes = [2, 256], strides = [1, 1]} : vector<8x256xf32> to vector<2x256xf32>
    %6 = arith.mulf %4, %4 : vector<2x256xf32>
    %7 = arith.mulf %5, %5 : vector<2x256xf32>
    %8 = arith.addf %6, %7 : vector<2x256xf32>
    %cst = arith.constant dense<0.000000e+00> : vector<256xf32>
    %9 = vector.multi_reduction <add>, %8, %cst [0] : vector<2x256xf32> to vector<256xf32>
    %10 = vector.shape_cast %9 : vector<256xf32> to vector<1x256xf32>
    %c0_4 = arith.constant 0 : index
    %c0_5 = arith.constant 0 : index
    %11 = vector.load %arg6[%c0_4, %c0_5] : memref<1x256xf32, #tpu.memory_space<vmem>>, vector<1x256xf32>
    tpu.vector_store %arg6[%c0_4, %c0_5], %10 {strides = array<i32>} : memref<1x256xf32, #tpu.memory_space<vmem>>, vector<1x256xf32>,
    %12 = arith.truncf %1 : vector<8x256xf32> to vector<8x256xbf16>
    %13 = arith.truncf %3 : vector<8x256xf32> to vector<8x256xbf16>
    %c0_6 = arith.constant 0 : index
    %c0_7 = arith.constant 0 : index
    %14 = vector.load %arg2[%c0_6, %c0_7] : memref<256x256xbf16, #tpu.memory_space<vmem>>, vector<256x256xbf16>
    %c0_8 = arith.constant 0 : index
    %c0_9 = arith.constant 0 : index
    %15 = vector.load %arg3[%c0_8, %c0_9] : memref<256x256xbf16, #tpu.memory_space<vmem>>, vector<256x256xbf16>
    %cst_10 = arith.constant dense<0.000000e+00> : vector<8x256xf32>
    %16 = tpu.matmul %12, %14, %cst_10 {dimension_numbers = #tpu.dot_dimension_numbers<[1], [0], [0], [1], [0, 0, 1, 1], [], []>} : vector<8x256xbf16>, vector<256x256xbf16>, vector<8x256xf32> -> vector<8x256xf32>
    %cst_11 = arith.constant dense<0.000000e+00> : vector<8x256xf32>
    %17 = tpu.matmul %13, %15, %cst_11 {dimension_numbers = #tpu.dot_dimension_numbers<[1], [0], [0], [1], [0, 0, 1, 1], [], []>} : vector<8x256xbf16>, vector<256x256xbf16>, vector<8x256xf32> -> vector<8x256xf32>
    %18 = arith.subf %16, %17 : vector<8x256xf32>
    %cst_12 = arith.constant dense<0.000000e+00> : vector<8x256xf32>
    %19 = tpu.matmul %12, %15, %cst_12 {dimension_numbers = #tpu.dot_dimension_numbers<[1], [0], [0], [1], [0, 0, 1, 1], [], []>} : vector<8x256xbf16>, vector<256x256xbf16>, vector<8x256xf32> -> vector<8x256xf32>
    %cst_13 = arith.constant dense<0.000000e+00> : vector<8x256xf32>
    %20 = tpu.matmul %13, %14, %cst_13 {dimension_numbers = #tpu.dot_dimension_numbers<[1], [0], [0], [1], [0, 0, 1, 1], [], []>} : vector<8x256xbf16>, vector<256x256xbf16>, vector<8x256xf32> -> vector<8x256xf32>
    %21 = arith.addf %19, %20 : vector<8x256xf32>
    %22 = arith.mulf %18, %18 : vector<8x256xf32>
    %23 = arith.mulf %21, %21 : vector<8x256xf32>
    %24 = arith.addf %22, %23 : vector<8x256xf32>
    %c0_14 = arith.constant 0 : index
    %c0_15 = arith.constant 0 : index
    %25 = vector.load %arg4[%c0_14, %c0_15] : memref<256x128xf32, #tpu.memory_space<vmem>>, vector<256x128xf32>
    %cst_16 = arith.constant dense<0.000000e+00> : vector<8x128xf32>
    %26 = tpu.matmul %24, %25, %cst_16 {dimension_numbers = #tpu.dot_dimension_numbers<[1], [0], [0], [1], [0, 0, 1, 1], [], []>} : vector<8x256xf32>, vector<256x128xf32>, vector<8x128xf32> -> vector<8x128xf32>
    %c0_17 = arith.constant 0 : index
    %c0_18 = arith.constant 0 : index
    %27 = vector.load %arg5[%c0_17, %c0_18] : memref<8x128xf32, #tpu.memory_space<vmem>>, vector<8x128xf32>
    tpu.vector_store %arg5[%c0_17, %c0_18], %26 {strides = array<i32>} : memref<8x128xf32, #tpu.memory_space<vmem>>, vector<8x128xf32>,
    return
  }
  func.func @transform_0(%arg0: i32) -> (i32, i32, i32) {
    %c0_i32 = arith.constant 0 : i32
    %c0_i32_0 = arith.constant 0 : i32
    %c0_i32_1 = arith.constant 0 : i32
    %c0_i32_2 = arith.constant 0 : i32
    return %c0_i32, %c0_i32_0, %c0_i32_1 : i32, i32, i32
  }
  func.func @transform_1(%arg0: i32) -> (i32, i32) {
    %c0_i32 = arith.constant 0 : i32
    %c0_i32_0 = arith.constant 0 : i32
    %c0_i32_1 = arith.constant 0 : i32
    return %c0_i32, %c0_i32_0 : i32, i32
  }
  func.func @transform_2(%arg0: i32) -> (i32, i32) {
    %c0_i32 = arith.constant 0 : i32
    %c0_i32_0 = arith.constant 0 : i32
    %c0_i32_1 = arith.constant 0 : i32
    return %c0_i32, %c0_i32_0 : i32, i32
  }
  func.func @transform_3(%arg0: i32) -> (i32, i32) {
    %c0_i32 = arith.constant 0 : i32
    %c0_i32_0 = arith.constant 0 : i32
    %c0_i32_1 = arith.constant 0 : i32
    return %c0_i32, %c0_i32_0 : i32, i32
  }
  func.func @transform_4(%arg0: i32) -> (i32, i32) {
    %c0_i32 = arith.constant 0 : i32
    %c0_i32_0 = arith.constant 0 : i32
    %c0_i32_1 = arith.constant 0 : i32
    return %c0_i32, %c0_i32_0 : i32, i32
  }
  func.func @transform_5(%arg0: i32) -> (i32, i32) {
    %c0_i32 = arith.constant 0 : i32
    %c0_i32_0 = arith.constant 0 : i32
    %c0_i32_1 = arith.constant 0 : i32
    return %c0_i32, %c0_i32_0 : i32, i32
  }
}

</mosaic_0001>

<bundles_post_ra>
// kernel: msefsc.1
= control target key start
LH: loop header
LB: loop body
LE: loop exit
PB: predicated region body
PF: predicated region fallthrough
CT: control target
= control target key end

     0   :  { %vm30_vm0 = vcmask 1041408   ;;  %v973_v36 = vmov 1966171168   ;;  %v51_v38 = vlaneseq  ;;  %s1338_s1 = inlined_call_operand.vmem [shape: bf16[256,256], index: 1, kind: input, shape index: {}]   ;;  %s1339_s0 = inlined_call_operand.vmem [shape: f32[2,8,256], index: 0, kind: input, shape index: {}]   ;;  %s1340_s2 = inlined_call_operand.vmem [shape: bf16[256,256], index: 2, kind: input, shape index: {}]   ;;  %s1341_s5 = inlined_call_operand.vmem [shape: f32[1,256], index: 5, kind: output, shape index: {1}]   ;;  %s1342_s3 = inlined_call_operand.vmem [shape: f32[256,128], index: 3, kind: input, shape index: {}]   ;;  %s1343_s4 = inlined_call_operand.vmem [shape: f32[8,128], index: 4, kind: output, shape index: {0}]  }
   0x1   :  { %v877_v0 = vld [vmem:[%s1338_s1 + $0x4] ss:$8 sps:$4 sm:$0xff]   ;;  %v879_v1 = vld [vmem:[%s1338_s1] ss:$8 sps:$4 sm:$0xff]   ;;  %v880_v2 = vld [vmem:[%s1338_s1 + $0x14] ss:$8 sps:$4 sm:$0xff]   ;;  %v49_v37 = vunpack.c.l.s4 %v973_v36 }
   0x2   :  { %296 = vmatprep.subr.bf16.mxu1 %v877_v0  ;;  %540 = vmatprep.subr.bf16.mxu0 %v877_v0  ;;  %v882_v3 = vld [vmem:[%s1338_s1 + $0x10] ss:$8 sps:$4 sm:$0xff]   ;;  %v883_v4 = vld [vmem:[%s1338_s1 + $0x24] ss:$8 sps:$4 sm:$0xff]   ;;  %v885_v5 = vld [vmem:[%s1338_s1 + $0x20] ss:$8 sps:$4 sm:$0xff]  }
   0x3   :  { %297 = vmatpush1.bf16.msra.mxu1 %v879_v1  ;;  %541 = vmatpush1.bf16.msra.mxu0 %v879_v1  ;;  %v886_v6 = vld [vmem:[%s1338_s1 + $0x34] ss:$8 sps:$4 sm:$0xff]   ;;  %v888_v7 = vld [vmem:[%s1338_s1 + $0x30] ss:$8 sps:$4 sm:$0xff]   ;;  %v889_v8 = vld [vmem:[%s1338_s1 + $0x44] ss:$8 sps:$4 sm:$0xff]   ;;  %v50_v45 = vunpack.c.0.s8 %v49_v37 }
   0x4   :  { %298 = vmatprep.subr.bf16.mxu1 %v880_v2  ;;  %542 = vmatprep.subr.bf16.mxu0 %v880_v2  ;;  %v891_v9 = vld [vmem:[%s1338_s1 + $0x40] ss:$8 sps:$4 sm:$0xff]   ;;  %v892_v10 = vld [vmem:[%s1338_s1 + $0x54] ss:$8 sps:$4 sm:$0xff]   ;;  %v894_v11 = vld [vmem:[%s1338_s1 + $0x50] ss:$8 sps:$4 sm:$0xff]  }
   0x5   :  { %v895_v12 = vld [vmem:[%s1338_s1 + $0x64] ss:$8 sps:$4 sm:$0xff]   ;;  %v897_v18 = vld [vmem:[%s1338_s1 + $0x60] ss:$8 sps:$4 sm:$0xff]   ;;  %v740_v19 = vld [vmem:[%s1339_s0 + $0x18] sm:$0xff]  ;;  %v52_v46 = vshrl.u32 %v51_v38, 7 }
   0x6   :  { %v20_v13 = vld [vmem:[%s1339_s0 + $0x8] sm:$0xff]  ;;  %v1049_v14 = vld [vmem:[%s1339_s0] sm:$0xff]  ;;  %v1064_v20 = vld [vmem:[%s1339_s0 + $0x10] sm:$0xff]  ;;  %v27_v22 = vmul.f32 %v740_v19, %v740_v19  ;;  %v1069_v23 = vpack.c.bf16 %v740_v19, %v740_v19  ;;  %vm65_vm1 = vcmp.lt.s32.totalorder %v51_v38, 256 }
   0x7   :  { %299 = vmatpush1.bf16.msra.mxu1 %v882_v3  ;;  %543 = vmatpush1.bf16.msra.mxu0 %v882_v3  ;;  %v25_v15 = vmul.f32 %v20_v13, %v20_v13  ;;  %v1051_v16 = vpack.c.bf16 %v20_v13, %v20_v13  ;;  %v24_v17 = vmul.f32 %v1049_v14, %v1049_v14  ;;  %v898_v21 = vld [vmem:[%s1338_s1 + $0x74] ss:$8 sps:$4 sm:$0xff]   ;;  %v900_v27 = vld [vmem:[%s1338_s1 + $0x70] ss:$8 sps:$4 sm:$0xff]   ;;  %v901_v28 = vld [vmem:[%s1338_s1 + $0x84] ss:$8 sps:$4 sm:$0xff]  }
   0x8   :  { %300 = vmatprep.subr.bf16.mxu1 %v883_v4  ;;  %544 = vmatprep.subr.bf16.mxu0 %v883_v4  ;;  %v26_v24 = vmul.f32 %v1064_v20, %v1064_v20  ;;  %v903_v33 = vld [vmem:[%s1338_s1 + $0x80] ss:$8 sps:$4 sm:$0xff]   ;;  %v904_v39 = vld [vmem:[%s1338_s1 + $0x94] ss:$8 sps:$4 sm:$0xff]   ;;  %v906_v42 = vld [vmem:[%s1338_s1 + $0x90] ss:$8 sps:$4 sm:$0xff]   ;;  %v53_v53 = vsub.s32 %v50_v45, %v52_v46  ;;  %v1134_v4 = vpack.c.bf16 %v1049_v14, %v1049_v14 }
   0x9   :  { %328 = vmatprep.mubr.bf16.mxu1 %v1051_v16  ;;  %v29_v25 = vadd.f32 %v27_v22, %v25_v15  ;;  %572 = vmatprep.mubr.bf16.mxu0 %v1069_v23  ;;  %v907_v47 = vld [vmem:[%s1338_s1 + $0xa4] ss:$8 sps:$4 sm:$0xff]   ;;  %v909_v50 = vld [vmem:[%s1338_s1 + $0xa0] ss:$8 sps:$4 sm:$0xff]   ;;  %v910_v54 = vld [vmem:[%s1338_s1 + $0xb4] ss:$8 sps:$4 sm:$0xff]  }
   0xa   :  { %v28_v26 = vadd.f32 %v26_v24, %v24_v17  ;;  %v912_v56 = vld [vmem:[%s1338_s1 + $0xb0] ss:$8 sps:$4 sm:$0xff]   ;;  %v913_v58 = vld [vmem:[%s1338_s1 + $0xc4] ss:$8 sps:$4 sm:$0xff]   ;;  %v915_v60 = vld [vmem:[%s1338_s1 + $0xc0] ss:$8 sps:$4 sm:$0xff]  }
   0xb   :  { %301 = vmatpush1.bf16.msra.mxu1 %v885_v5  ;;  %545 = vmatpush1.bf16.msra.mxu0 %v885_v5  ;;  %v38_v29 = vsel %vm30_vm0, %v29_v25, 0.0  ;;  %v916_v61 = vld [vmem:[%s1338_s1 + $0xd4] ss:$8 sps:$4 sm:$0xff]   ;;  %v918_v62 = vld [vmem:[%s1338_s1 + $0xd0] ss:$8 sps:$4 sm:$0xff]   ;;  %v1138_v5 = vpack.c.bf16 %v1064_v20, %v1064_v20  ;;  %v644_v37 = vld [vmem:[%s1342_s3 + $0x80] sm:$0xff] }
   0xc   :  { %302 = vmatprep.subr.bf16.mxu1 %v886_v6  ;;  %546 = vmatprep.subr.bf16.mxu0 %v886_v6  ;;  %v31_v30 = vsel %vm30_vm0, %v28_v26, 0.0  ;;  %v39_v31 = vrot.slane %v38_v29, 4  ;;  %v919_v63 = vld [vmem:[%s1338_s1 + $0xe4] ss:$8 sps:$4 sm:$0xff]   ;;  %v921_v0 = vld [vmem:[%s1338_s1 + $0xe0] ss:$8 sps:$4 sm:$0xff]  }
   0xd   :  { %v32_v32 = vrot.slane %v31_v30, 4  ;;  %v922_v1 = vld [vmem:[%s1338_s1 + $0xf4] ss:$8 sps:$4 sm:$0xff]   ;;  %v924_v2 = vld [vmem:[%s1338_s1 + $0xf0] ss:$8 sps:$4 sm:$0xff]   ;;  %v645_v38 = vld [vmem:[%s1342_s3 + $0x88] sm:$0xff] }
   0xe   :  { %v40_v34 = vadd.f32 %v39_v31, %v38_v29  ;;  %v927_v3 = vld [vmem:[%s1340_s2 + $0x4] ss:$8 sps:$4 sm:$0xff]   ;;  %v925_v6 = vld [vmem:[%s1340_s2] ss:$8 sps:$4 sm:$0xff]   ;;  %v942_v15 = vld [vmem:[%s1340_s2 + $0x54] ss:$8 sps:$4 sm:$0xff]  }
   0xf   :  { %303 = vmatpush1.bf16.msra.mxu1 %v888_v7  ;;  %547 = vmatpush1.bf16.msra.mxu0 %v888_v7  ;;  %v33_v35 = vadd.f32 %v32_v32, %v31_v30  ;;  %v930_v7 = vld [vmem:[%s1340_s2 + $0x14] ss:$8 sps:$4 sm:$0xff]   ;;  %v939_v13 = vld [vmem:[%s1340_s2 + $0x44] ss:$8 sps:$4 sm:$0xff]   ;;  %v937_v14 = vld [vmem:[%s1340_s2 + $0x40] ss:$8 sps:$4 sm:$0xff]  }
  0x10   :  { %304 = vmatprep.subr.bf16.mxu1 %v889_v8  ;;  %548 = vmatprep.subr.bf16.mxu0 %v889_v8  ;;  %v41_v40 = vrot.slane %v40_v34, 2  ;;  %v928_v8 = vld [vmem:[%s1340_s2 + $0x10] ss:$8 sps:$4 sm:$0xff]   ;;  %v945_v17 = vld [vmem:[%s1340_s2 + $0x64] ss:$8 sps:$4 sm:$0xff]  }
  0x11   :  { %v34_v41 = vrot.slane %v33_v35, 2  ;;  %v948_v19 = vld [vmem:[%s1340_s2 + $0x74] ss:$8 sps:$4 sm:$0xff]   ;;  %v946_v20 = vld [vmem:[%s1340_s2 + $0x70] ss:$8 sps:$4 sm:$0xff]  }
  0x12   :  { %v42_v43 = vadd.f32 %v41_v40, %v40_v34  ;;  %v949_v22 = vld [vmem:[%s1340_s2 + $0x80] ss:$8 sps:$4 sm:$0xff]   ;;  %v952_v24 = vld [vmem:[%s1340_s2 + $0x90] ss:$8 sps:$4 sm:$0xff]   ;;  %v957_v25 = vld [vmem:[%s1340_s2 + $0xa4] ss:$8 sps:$4 sm:$0xff]   ;;  %v840_v40 = vpack.c.bf16 %v645_v38, %v644_v37 }
  0x13   :  { %305 = vmatpush1.bf16.msra.mxu1 %v891_v9  ;;  %549 = vmatpush1.bf16.msra.mxu0 %v891_v9  ;;  %v35_v44 = vadd.f32 %v34_v41, %v33_v35  ;;  %v933_v9 = vld [vmem:[%s1340_s2 + $0x24] ss:$8 sps:$4 sm:$0xff]   ;;  %v955_v26 = vld [vmem:[%s1340_s2 + $0xa0] ss:$8 sps:$4 sm:$0xff]   ;;  %v966_v31 = vld [vmem:[%s1340_s2 + $0xd4] ss:$8 sps:$4 sm:$0xff]  }
  0x14   :  { %306 = vmatprep.subr.bf16.mxu1 %v892_v10  ;;  %550 = vmatprep.subr.bf16.mxu0 %v892_v10  ;;  %v43_v48 = vrot.slane %v42_v43, 1  ;;  %v931_v10 = vld [vmem:[%s1340_s2 + $0x20] ss:$8 sps:$4 sm:$0xff]   ;;  %v963_v29 = vld [vmem:[%s1340_s2 + $0xc4] ss:$8 sps:$4 sm:$0xff]   ;;  %v630_v46 = vld [vmem:[%s1342_s3 + $0x10] sm:$0xff] }
  0x15   :  { %v36_v49 = vrot.slane %v35_v44, 1  ;;  %v961_v30 = vld [vmem:[%s1340_s2 + $0xc0] ss:$8 sps:$4 sm:$0xff]   ;;  %v964_v32 = vld [vmem:[%s1340_s2 + $0xd0] ss:$8 sps:$4 sm:$0xff]  }
  0x16   :  { %v44_v51 = vadd.f32 %v43_v48, %v42_v43  ;;  %v967_v34 = vld [vmem:[%s1340_s2 + $0xe0] ss:$8 sps:$4 sm:$0xff]   ;;  %v972_v35 = vld [vmem:[%s1340_s2 + $0xf4] ss:$8 sps:$4 sm:$0xff]   ;;  %v970_v36 = vld [vmem:[%s1340_s2 + $0xf0] ss:$8 sps:$4 sm:$0xff]  }
  0x17   :  { %307 = vmatpush1.bf16.msra.mxu1 %v894_v11  ;;  %551 = vmatpush1.bf16.msra.mxu0 %v894_v11  ;;  %v37_v52 = vadd.f32 %v36_v49, %v35_v44  ;;  %v936_v11 = vld [vmem:[%s1340_s2 + $0x34] ss:$8 sps:$4 sm:$0xff]   ;;  %v629_v41 = vld [vmem:[%s1342_s3 + $0x8] sm:$0xff]  ;;  %v648_v48 = vld [vmem:[%s1342_s3 + $0xa0] sm:$0xff] }
  0x18   :  { %308 = vmatprep.subr.bf16.mxu1 %v895_v12  ;;  %552 = vmatprep.subr.bf16.mxu0 %v895_v12  ;;  %v934_v12 = vld [vmem:[%s1340_s2 + $0x30] ss:$8 sps:$4 sm:$0xff]   ;;  %v649_v49 = vld [vmem:[%s1342_s3 + $0xa8] sm:$0xff] }
  0x19   :  { %v47_v55 = vcombine.low %v37_v52, %v44_v51  ;;  %v647_v43 = vld [vmem:[%s1342_s3 + $0x98] sm:$0xff]  ;;  %v848_v51 = vpack.c.bf16 %v649_v49, %v648_v48  ;;  %v632_v52 = vld [vmem:[%s1342_s3 + $0x20] sm:$0xff] }
  0x1b   :  { %309 = vmatpush1.bf16.msra.mxu1 %v897_v18  ;;  %553 = vmatpush1.bf16.msra.mxu0 %v897_v18  ;;  %v54_v57 = vrot.slane %v47_v55, %v53_v53  ;;  %v943_v18 = vld [vmem:[%s1340_s2 + $0x60] ss:$8 sps:$4 sm:$0xff]   ;;  %v651_v55 = vld [vmem:[%s1342_s3 + $0xb8] sm:$0xff] }
  0x1c   :  { %310 = vmatprep.subr.bf16.mxu1 %v898_v21  ;;  %554 = vmatprep.subr.bf16.mxu0 %v898_v21  ;;  %v951_v21 = vld [vmem:[%s1340_s2 + $0x84] ss:$8 sps:$4 sm:$0xff]  }
  0x1d   :  { %v61_v59 = vrot.slane %v54_v57, %v53_v53  ;;  %v633_v53 = vld [vmem:[%s1342_s3 + $0x28] sm:$0xff] }
  0x1f   :  { %311 = vmatpush1.bf16.msra.mxu1 %v900_v27  ;;  %555 = vmatpush1.bf16.msra.mxu0 %v900_v27  ;;  %67 = vst.msk [vmem:[%s1341_s5] sm:$0x3] %vm65_vm1, %v61_v59  ;;  %v960_v27 = vld [vmem:[%s1340_s2 + $0xb4] ss:$8 sps:$4 sm:$0xff]  }
  0x20   :  { %312 = vmatprep.subr.bf16.mxu1 %v901_v28  ;;  %556 = vmatprep.subr.bf16.mxu0 %v901_v28  ;;  %v958_v28 = vld [vmem:[%s1340_s2 + $0xb0] ss:$8 sps:$4 sm:$0xff]  }
  0x21   :  { %v635_v59 = vld [vmem:[%s1342_s3 + $0x38] sm:$0xff] }
  0x23   :  { %313 = vmatpush1.bf16.msra.mxu1 %v903_v33  ;;  %557 = vmatpush1.bf16.msra.mxu0 %v903_v33  ;;  %v969_v33 = vld [vmem:[%s1340_s2 + $0xe4] ss:$8 sps:$4 sm:$0xff]  }
  0x24   :  { %314 = vmatprep.subr.bf16.mxu1 %v904_v39  ;;  %558 = vmatprep.subr.bf16.mxu0 %v904_v39  ;;  %v628_v39 = vld [vmem:[%s1342_s3] sm:$0xff] }
  0x25   :  { %v842_v44 = vpack.c.bf16 %v629_v41, %v628_v39 }
  0x27   :  { %315 = vmatpush1.bf16.msra.mxu1 %v906_v42  ;;  %559 = vmatpush1.bf16.msra.mxu0 %v906_v42  ;;  %v646_v42 = vld [vmem:[%s1342_s3 + $0x90] sm:$0xff] }
  0x28   :  { %316 = vmatprep.subr.bf16.mxu1 %v907_v47  ;;  %560 = vmatprep.subr.bf16.mxu0 %v907_v47  ;;  %v844_v45 = vpack.c.bf16 %v647_v43, %v646_v42  ;;  %v631_v47 = vld [vmem:[%s1342_s3 + $0x18] sm:$0xff] }
  0x2b   :  { %317 = vmatpush1.bf16.msra.mxu1 %v909_v50  ;;  %561 = vmatpush1.bf16.msra.mxu0 %v909_v50  ;;  %v846_v50 = vpack.c.bf16 %v631_v47, %v630_v46 }
  0x2c   :  { %318 = vmatprep.subr.bf16.mxu1 %v910_v54  ;;  %562 = vmatprep.subr.bf16.mxu0 %v910_v54  ;;  %v650_v54 = vld [vmem:[%s1342_s3 + $0xb0] sm:$0xff] }
  0x2d   :  { %v852_v57 = vpack.c.bf16 %v651_v55, %v650_v54 }
  0x2f   :  { %319 = vmatpush1.bf16.msra.mxu1 %v912_v56  ;;  %563 = vmatpush1.bf16.msra.mxu0 %v912_v56  ;;  %v850_v56 = vpack.c.bf16 %v633_v53, %v632_v52 }
  0x30   :  { %320 = vmatprep.subr.bf16.mxu1 %v913_v58  ;;  %564 = vmatprep.subr.bf16.mxu0 %v913_v58  ;;  %v634_v58 = vld [vmem:[%s1342_s3 + $0x30] sm:$0xff] }
  0x33   :  { %321 = vmatpush1.bf16.msra.mxu1 %v915_v60  ;;  %565 = vmatpush1.bf16.msra.mxu0 %v915_v60  ;;  %v652_v60 = vld [vmem:[%s1342_s3 + $0xc0] sm:$0xff] }
  0x34   :  { %322 = vmatprep.subr.bf16.mxu1 %v916_v61  ;;  %566 = vmatprep.subr.bf16.mxu0 %v916_v61  ;;  %v653_v61 = vld [vmem:[%s1342_s3 + $0xc8] sm:$0xff] }
  0x37   :  { %323 = vmatpush1.bf16.msra.mxu1 %v918_v62  ;;  %567 = vmatpush1.bf16.msra.mxu0 %v918_v62  ;;  %v854_v62 = vpack.c.bf16 %v635_v59, %v634_v58 }
  0x38   :  { %324 = vmatprep.subr.bf16.mxu1 %v919_v63  ;;  %568 = vmatprep.subr.bf16.mxu0 %v919_v63  ;;  %v856_v63 = vpack.c.bf16 %v653_v61, %v652_v60 }
  0x3b   :  { %325 = vmatpush1.bf16.msra.mxu1 %v921_v0  ;;  %569 = vmatpush1.bf16.msra.mxu0 %v921_v0  ;;  %v636_v0 = vld [vmem:[%s1342_s3 + $0x40] sm:$0xff] }
  0x3c   :  { %326 = vmatprep.subr.bf16.mxu1 %v922_v1  ;;  %570 = vmatprep.subr.bf16.mxu0 %v922_v1  ;;  %v637_v1 = vld [vmem:[%s1342_s3 + $0x48] sm:$0xff] }
  0x3f   :  { %327 = vmatpush1.bf16.msra.mxu1 %v924_v2  ;;  %571 = vmatpush1.bf16.msra.mxu0 %v924_v2  ;;  %v654_v2 = vld [vmem:[%s1342_s3 + $0xd0] sm:$0xff] }
  0x40   :  { %497 = vmatprep.subr.bf16.mxu1 %v927_v3  ;;  %581 = vmatprep.subr.bf16.mxu0 %v927_v3  ;;  %v655_v3 = vld [vmem:[%s1342_s3 + $0xd8] sm:$0xff] }
  0x42   :  { %329 = vmatmul.mubr.bf16.vlgmr.msra.gmra.mrb[0].mxu1 %v1134_v4  ;;  %573 = vmatmul.mubr.bf16.vlgmr.msra.gmra.mrb[0].mxu0 %v1138_v5 }
  0x43   :  { %498 = vmatpush1.bf16.msra.mxu1 %v925_v6  ;;  %582 = vmatpush1.bf16.msra.mxu0 %v925_v6  ;;  %v638_v6 = vld [vmem:[%s1342_s3 + $0x50] sm:$0xff] }
  0x44   :  { %499 = vmatprep.subr.bf16.mxu1 %v930_v7  ;;  %583 = vmatprep.subr.bf16.mxu0 %v930_v7  ;;  %v639_v7 = vld [vmem:[%s1342_s3 + $0x58] sm:$0xff] }
  0x45   :  { %529 = vmatprep.mubr.bf16.mxu1 %v1069_v23  ;;  %613 = vmatprep.mubr.bf16.mxu0 %v1051_v16  ;;  %v940_v16 = vld [vmem:[%s1340_s2 + $0x50] ss:$8 sps:$4 sm:$0xff]   ;;  %v954_v23 = vld [vmem:[%s1340_s2 + $0x94] ss:$8 sps:$4 sm:$0xff]  }
  0x47   :  { %500 = vmatpush1.bf16.msra.mxu1 %v928_v8  ;;  %584 = vmatpush1.bf16.msra.mxu0 %v928_v8  ;;  %v862_v8 = vpack.c.bf16 %v639_v7, %v638_v6 }
  0x48   :  { %501 = vmatprep.subr.bf16.mxu1 %v933_v9  ;;  %585 = vmatprep.subr.bf16.mxu0 %v933_v9  ;;  %v656_v9 = vld [vmem:[%s1342_s3 + $0xe0] sm:$0xff] }
  0x4b   :  { %502 = vmatpush1.bf16.msra.mxu1 %v931_v10  ;;  %586 = vmatpush1.bf16.msra.mxu0 %v931_v10  ;;  %v657_v10 = vld [vmem:[%s1342_s3 + $0xe8] sm:$0xff] }
  0x4c   :  { %503 = vmatprep.subr.bf16.mxu1 %v936_v11  ;;  %587 = vmatprep.subr.bf16.mxu0 %v936_v11  ;;  %v864_v11 = vpack.c.bf16 %v657_v10, %v656_v9 }
  0x4f   :  { %504 = vmatpush1.bf16.msra.mxu1 %v934_v12  ;;  %588 = vmatpush1.bf16.msra.mxu0 %v934_v12  ;;  %v640_v12 = vld [vmem:[%s1342_s3 + $0x60] sm:$0xff] }
  0x50   :  { %505 = vmatprep.subr.bf16.mxu1 %v939_v13  ;;  %589 = vmatprep.subr.bf16.mxu0 %v939_v13  ;;  %v641_v13 = vld [vmem:[%s1342_s3 + $0x68] sm:$0xff] }
  0x53   :  { %506 = vmatpush1.bf16.msra.mxu1 %v937_v14  ;;  %590 = vmatpush1.bf16.msra.mxu0 %v937_v14  ;;  %v866_v14 = vpack.c.bf16 %v641_v13, %v640_v12 }
  0x54   :  { %507 = vmatprep.subr.bf16.mxu1 %v942_v15  ;;  %591 = vmatprep.subr.bf16.mxu0 %v942_v15  ;;  %v658_v15 = vld [vmem:[%s1342_s3 + $0xf0] sm:$0xff] }
  0x57   :  { %508 = vmatpush1.bf16.msra.mxu1 %v940_v16  ;;  %592 = vmatpush1.bf16.msra.mxu0 %v940_v16  ;;  %v659_v16 = vld [vmem:[%s1342_s3 + $0xf8] sm:$0xff] }
  0x58   :  { %509 = vmatprep.subr.bf16.mxu1 %v945_v17  ;;  %593 = vmatprep.subr.bf16.mxu0 %v945_v17  ;;  %v868_v17 = vpack.c.bf16 %v659_v16, %v658_v15 }
  0x5b   :  { %510 = vmatpush1.bf16.msra.mxu1 %v943_v18  ;;  %594 = vmatpush1.bf16.msra.mxu0 %v943_v18  ;;  %v642_v18 = vld [vmem:[%s1342_s3 + $0x70] sm:$0xff] }
  0x5c   :  { %511 = vmatprep.subr.bf16.mxu1 %v948_v19  ;;  %595 = vmatprep.subr.bf16.mxu0 %v948_v19  ;;  %v643_v19 = vld [vmem:[%s1342_s3 + $0x78] sm:$0xff] }
  0x5f   :  { %512 = vmatpush1.bf16.msra.mxu1 %v946_v20  ;;  %596 = vmatpush1.bf16.msra.mxu0 %v946_v20  ;;  %v870_v20 = vpack.c.bf16 %v643_v19, %v642_v18 }
  0x60   :  { %513 = vmatprep.subr.bf16.mxu1 %v951_v21  ;;  %597 = vmatprep.subr.bf16.mxu0 %v951_v21 }
  0x63   :  { %514 = vmatpush1.bf16.msra.mxu1 %v949_v22  ;;  %598 = vmatpush1.bf16.msra.mxu0 %v949_v22 }
  0x64   :  { %515 = vmatprep.subr.bf16.mxu1 %v954_v23  ;;  %599 = vmatprep.subr.bf16.mxu0 %v954_v23 }
  0x67   :  { %516 = vmatpush1.bf16.msra.mxu1 %v952_v24  ;;  %600 = vmatpush1.bf16.msra.mxu0 %v952_v24 }
  0x68   :  { %517 = vmatprep.subr.bf16.mxu1 %v957_v25  ;;  %601 = vmatprep.subr.bf16.mxu0 %v957_v25 }
  0x6b   :  { %518 = vmatpush1.bf16.msra.mxu1 %v955_v26  ;;  %602 = vmatpush1.bf16.msra.mxu0 %v955_v26 }
  0x6c   :  { %519 = vmatprep.subr.bf16.mxu1 %v960_v27  ;;  %603 = vmatprep.subr.bf16.mxu0 %v960_v27 }
  0x6f   :  { %520 = vmatpush1.bf16.msra.mxu1 %v958_v28  ;;  %604 = vmatpush1.bf16.msra.mxu0 %v958_v28 }
  0x70   :  { %521 = vmatprep.subr.bf16.mxu1 %v963_v29  ;;  %605 = vmatprep.subr.bf16.mxu0 %v963_v29 }
  0x73   :  { %522 = vmatpush1.bf16.msra.mxu1 %v961_v30  ;;  %606 = vmatpush1.bf16.msra.mxu0 %v961_v30 }
  0x74   :  { %523 = vmatprep.subr.bf16.mxu1 %v966_v31  ;;  %607 = vmatprep.subr.bf16.mxu0 %v966_v31 }
  0x77   :  { %524 = vmatpush1.bf16.msra.mxu1 %v964_v32  ;;  %608 = vmatpush1.bf16.msra.mxu0 %v964_v32 }
  0x78   :  { %525 = vmatprep.subr.bf16.mxu1 %v969_v33  ;;  %609 = vmatprep.subr.bf16.mxu0 %v969_v33 }
  0x7b   :  { %526 = vmatpush1.bf16.msra.mxu1 %v967_v34  ;;  %610 = vmatpush1.bf16.msra.mxu0 %v967_v34 }
  0x7c   :  { %527 = vmatprep.subr.bf16.mxu1 %v972_v35  ;;  %611 = vmatprep.subr.bf16.mxu0 %v972_v35 }
  0x7f   :  { %528 = vmatpush1.bf16.msra.mxu1 %v970_v36  ;;  %612 = vmatpush1.bf16.msra.mxu0 %v970_v36 }
  0x80   :  { %841 = vmatprep.subr.bf16.mxu1 %v840_v40 }
  0x82   :  { %530 = vmatmul.mubr.bf16.vlgmr.msra.gmra.mrb[4].mxu1 %v1138_v5  ;;  %614 = vmatmul.mubr.bf16.vlgmr.msra.gmra.mrb[0].mxu0 %v1134_v4  ;;  %v858_v4 = vpack.c.bf16 %v637_v1, %v636_v0  ;;  %v860_v5 = vpack.c.bf16 %v655_v3, %v654_v2 }
  0x83   :  { %843 = vmatpush3.bf16.msra.mxu1 %v842_v44 }
  0x84   :  { %845 = vmatprep.subr.bf16.mxu1 %v844_v45 }
  0x87   :  { %847 = vmatpush3.bf16.msra.mxu1 %v846_v50 }
  0x88   :  { %849 = vmatprep.subr.bf16.mxu1 %v848_v51 }
  0x8b   :  { %851 = vmatpush3.bf16.msra.mxu1 %v850_v56 }
  0x8c   :  { %853 = vmatprep.subr.bf16.mxu1 %v852_v57 }
  0x8f   :  { %855 = vmatpush3.bf16.msra.mxu1 %v854_v62 }
  0x90   :  { %857 = vmatprep.subr.bf16.mxu1 %v856_v63 }
  0x93   :  { %859 = vmatpush3.bf16.msra.mxu1 %v858_v4 }
  0x94   :  { %861 = vmatprep.subr.bf16.mxu1 %v860_v5 }
  0x97   :  { %863 = vmatpush3.bf16.msra.mxu1 %v862_v8 }
  0x98   :  { %865 = vmatprep.subr.bf16.mxu1 %v864_v11 }
  0x9b   :  { %867 = vmatpush3.bf16.msra.mxu1 %v866_v14 }
  0x9c   :  { %869 = vmatprep.subr.bf16.mxu1 %v868_v17 }
  0x9f   :  { %871 = vmatpush3.bf16.msra.mxu1 %v870_v20 }
 0x115   :  { %v330_v21 = vpop.f32.mrb[0].mxu1 }
 0x116   :  { %v332_v22 = vpop.f32.mrb[1].mxu1 }
 0x117   :  { %v334_v23 = vpop.f32.mrb[2].mxu1 }
 0x118   :  { %v335_v24 = vpop.f32.mrb[3].mxu1 }
 0x155   :  { %v531_v25 = vpop.f32.mrb[4].mxu1  ;;  %v615_v26 = vpop.f32.mrb[0].mxu0 }
 0x156   :  { %v538_v27 = vsub.f32 %v330_v21, %v531_v25  ;;  %v533_v28 = vpop.f32.mrb[5].mxu1  ;;  %v617_v29 = vpop.f32.mrb[1].mxu0  ;;  %v624_v34 = vmul.f32 %v615_v26, %v615_v26 }
 0x157   :  { %v539_v30 = vsub.f32 %v332_v22, %v533_v28  ;;  %v535_v31 = vpop.f32.mrb[6].mxu1  ;;  %v619_v32 = vpop.f32.mrb[2].mxu0  ;;  %v625_v38 = vmul.f32 %v617_v29, %v617_v29 }
 0x158   :  { %v622_v33 = vmul.f32 %v538_v27, %v538_v27  ;;  %v536_v35 = vpop.f32.mrb[7].mxu1  ;;  %v620_v36 = vpop.f32.mrb[3].mxu0 }
 0x159   :  { %v623_v37 = vmul.f32 %v539_v30, %v539_v30 }
 0x15a   :  { %v626_v39 = vadd.f32 %v624_v34, %v622_v33 }
 0x15b   :  { %v627_v40 = vadd.f32 %v625_v38, %v623_v37 }
 0x15d   :  { %724 = vmatprep.mubr.f32.mxu1 %v627_v40 }
 0x15e   :  { %725 = vmatmul.mubr.f32.vlgmr.msra.gmra.mrb[8].mxu1 %v626_v39 }
 0x231   :  { %v837_v41 = vpop.f32.mrb[8].mxu1 }
 0x232   :  { %v838_v42 = vpop.f32.mrb[9].mxu1 }
 0x233   :  { %v839_v43 = vadd.f32 %v838_v42, %v837_v41 }
 0x235   :  { %730 = vst [vmem:[%s1343_s4] sm:$0xff] %v839_v43 }

</bundles_post_ra>
